<compile_context>
chip_gen: v5e
topology: v5e:2x2
jax: 0.10.0
libtpu: 0.0.40
codegen_flags: <defaults>
</compile_context>

<pallas_src>
import functools

import jax
import jax.numpy as jnp
from jax.experimental import pallas as pl
from jax.experimental.pallas import tpu as pltpu


def _cdiv(a, b):
    return (a + b - 1) // b


def _round_up(x, m):
    return (x + m - 1) // m * m


def _round_down(x, m):
    return x // m * m


def _rce_kernel(logits_ref, labels_ref, out_ref, *, n_rows, block_b, n_classes,
                use_mxu):
    """Per-row unscaled reverse cross-entropy: sum_{c != y}(lse - x_c)."""
    i = pl.program_id(0)

    x_in = logits_ref[...]                       # (TB, C) native dtype
    labels = labels_ref[...]                     # (TB, 1) int32

    # Row max on the native dtype (exact; halves VALU/vreg work for bf16 on
    # v6e/v7x), then upcast once for exp / accumulation.
    m = jnp.max(x_in, axis=1, keepdims=True).astype(jnp.float32)     # (TB, 1)
    x = x_in.astype(jnp.float32)                                     # (TB, C)

    t = jnp.exp(x - m)                                               # (TB, C)
    if use_mxu:
        # Offload the lane reductions to the idle MXU: every column of the
        # all-ones RHS carries the row sum; take column 0.
        ones = jnp.ones((n_classes, 128), jnp.float32)
        s = jnp.dot(t, ones, preferred_element_type=jnp.float32)[:, :1]
    else:
        s = jnp.sum(t, axis=1, keepdims=True)                        # (TB, 1)
    lse = m + jnp.log(s)                                             # (TB, 1)

    # Stable fused reduction: sum over classes of (lse - x), excluding c == y.
    col_ids = jax.lax.broadcasted_iota(jnp.int32, (1, n_classes), 1)
    contrib = jnp.where(col_ids == labels, 0.0, lse - x)             # (TB, C)
    if use_mxu:
        rce = jnp.dot(contrib, ones, preferred_element_type=jnp.float32)[:, :1]
    else:
        rce = jnp.sum(contrib, axis=1, keepdims=True)                # (TB, 1)

    # Zero out garbage rows of the ragged boundary tile (Pallas also drops the
    # out-of-bounds part of the output write).
    row_ids = jax.lax.broadcasted_iota(jnp.int32, (block_b, 1), 0) + i * block_b
    out_ref[...] = jnp.where(row_ids < n_rows, rce, 0.0)


def reverse_cross_entropy_loss(logits, labels, *, target_tile_bytes=4 * 1024 * 1024):
    """logits: (B, C) float (any dtype), labels: (B,) int -> scalar f32 loss."""
    b, c = logits.shape
    if c < 2:
        raise ValueError("ReverseCrossEntropyLoss requires n_classes >= 2.")

    itemsize = jnp.dtype(logits.dtype).itemsize
    sub = 16 if itemsize == 2 else 8             # sublane granularity per dtype

    # Generation-aware VMEM budgets: v5e/v6e have 128 MiB physical VMEM, v7x
    # has 64 MiB.  Account for the ~3 f32 in-kernel temporaries (upcast, exp,
    # masked select) on top of the double-buffered native-dtype input tile.
    try:
        phys_vmem = pltpu.get_tpu_info().vmem_capacity_bytes
    except Exception:
        phys_vmem = 64 * 1024 * 1024             # conservative (v7x-sized)
    if phys_vmem >= 128 * 1024 * 1024:           # v5e / v6e
        vmem_limit = 96 * 1024 * 1024
        work_budget = 64 * 1024 * 1024
    else:                                        # v7x
        vmem_limit = 48 * 1024 * 1024
        work_budget = 28 * 1024 * 1024

    bytes_per_row_dma = max(c * itemsize, 1)
    bytes_per_row_vmem = c * (2 * itemsize + 3 * 4) + 16
    tb = min(max(work_budget // bytes_per_row_vmem, 1),
             max(target_tile_bytes // bytes_per_row_dma, 1))
    # Keep >= 2 grid steps when the batch allows so v7x's 2 TCs both get work.
    if b > sub:
        tb = min(tb, _round_up(_cdiv(b, 2), sub))
    tb = max(sub, _round_down(tb, sub))
    if tb > b:
        tb = b          # block == full batch dim (allowed for any b)
    num_tiles = _cdiv(b, tb)

    labels2d = labels.astype(jnp.int32).reshape(b, 1)

    kernel = functools.partial(
        _rce_kernel, n_rows=b, block_b=tb, n_classes=c, use_mxu=(c >= 128))

    per_row = pl.pallas_call(
        kernel,
        out_shape=jax.ShapeDtypeStruct((b, 1), jnp.float32),
        grid=(num_tiles,),
        in_specs=[
            pl.BlockSpec((tb, c), lambda i: (i, 0)),   # logits tile, native dtype
            pl.BlockSpec((tb, 1), lambda i: (i, 0)),   # labels tile
        ],
        out_specs=pl.BlockSpec((tb, 1), lambda i: (i, 0)),
        compiler_params=pltpu.CompilerParams(
            dimension_semantics=("parallel",),          # shard over v7x's 2 TCs
            vmem_limit_bytes=vmem_limit,
        ),
    )(logits, labels2d)

    # One scalar scale at the end: 1/(C-1) (reverse one-hot) and 1/B (mean).
    return jnp.sum(per_row) / jnp.float32(b * (c - 1))


def _reference(logits, labels):
    x = logits.astype(jnp.float32)
    logp = jax.nn.log_softmax(x, axis=1)
    c = logits.shape[1]
    rev = (jax.nn.one_hot(labels, c, dtype=jnp.float32) - 1.0) / (c - 1)
    return jnp.mean(jnp.sum(logp * rev, axis=1))


if __name__ == "__main__":
    key = jax.random.PRNGKey(0)
    k1, k2, k3, k4, k5, k6 = jax.random.split(key, 6)

    # Case 1: f32 logits, batch a multiple of the sublane tile, single step.
    b1, c1 = 8, 16
    logits1 = jax.random.normal(k1, (b1, c1), dtype=jnp.float32)
    labels1 = jax.random.randint(k2, (b1,), 0, c1, dtype=jnp.int32)
    loss1 = reverse_cross_entropy_loss(logits1, labels1)
    jax.block_until_ready(loss1)
    ref1 = _reference(logits1, labels1)
    assert jnp.allclose(loss1, ref1, atol=1e-5, rtol=1e-5), (loss1, ref1)

    # Case 2: bf16 logits DMA'd natively (f32 compute in kernel), batch not a
    # multiple of the sublane tile (block equals the full batch dim).
    b2, c2 = 10, 16
    logits2 = jax.random.normal(k3, (b2, c2), dtype=jnp.float32).astype(jnp.bfloat16)
    labels2 = jax.random.randint(k4, (b2,), 0, c2, dtype=jnp.int32)
    loss2 = reverse_cross_entropy_loss(logits2, labels2)
    jax.block_until_ready(loss2)
    ref2 = _reference(logits2, labels2)
    assert jnp.allclose(loss2, ref2, atol=1e-4, rtol=1e-4), (loss2, ref2)

    # Case 3: f32 logits, C >= 128 (MXU-reduction path), ragged last tile with
    # a 2-step grid (no wrapper-side padding anywhere).
    b3, c3 = 37, 256
    logits3 = jax.random.normal(k5, (b3, c3), dtype=jnp.float32) * 2.0 + 1.0
    labels3 = jax.random.randint(k6, (b3,), 0, c3, dtype=jnp.int32)
    loss3 = reverse_cross_entropy_loss(logits3, labels3)
    jax.block_until_ready(loss3)
    ref3 = _reference(logits3, labels3)
    assert jnp.allclose(loss3, ref3, atol=2e-3, rtol=2e-3), (loss3, ref3)

    print("KERNEL_OK")
</pallas_src>

<mosaic_0001>
module attributes {stable_mosaic.version = 11 : i64} {
  func.func @_rce_kernel(%arg0: i32, %arg1: memref<8x16xf32, #tpu.memory_space<vmem>>, %arg2: memref<8x1xi32, #tpu.memory_space<vmem>>, %arg3: memref<8x1xf32, #tpu.memory_space<vmem>>) attributes {dimension_semantics = [#tpu.dimension_semantics<parallel>], iteration_bounds = array<i64: 1>, scalar_prefetch = 0 : i64, scratch_operands = 0 : i64, tpu.core_type = #tpu.core_type<tc>, window_params = [{transform_indices = @transform_0, window_bounds = array<i64: 8, 16>}, {transform_indices = @transform_1, window_bounds = array<i64: 8, 1>}, {transform_indices = @transform_2, window_bounds = array<i64: 8, 1>}]} {
    %c0 = arith.constant 0 : index
    %c0_0 = arith.constant 0 : index
    %0 = vector.load %arg1[%c0, %c0_0] : memref<8x16xf32, #tpu.memory_space<vmem>>, vector<8x16xf32>
    %c0_1 = arith.constant 0 : index
    %c0_2 = arith.constant 0 : index
    %1 = vector.load %arg2[%c0_1, %c0_2] : memref<8x1xi32, #tpu.memory_space<vmem>>, vector<8x1xi32>
    %cst = arith.constant dense<0xFF800000> : vector<8xf32>
    %2 = vector.multi_reduction <maximumf>, %0, %cst [1] : vector<8x16xf32> to vector<8xf32>
    %3 = vector.shape_cast %2 : vector<8xf32> to vector<8x1xf32>
    %4 = vector.broadcast %3 : vector<8x1xf32> to vector<8x16xf32>
    %5 = arith.subf %0, %4 : vector<8x16xf32>
    %6 = math.exp %5 : vector<8x16xf32>
    %cst_3 = arith.constant dense<0.000000e+00> : vector<8xf32>
    %7 = vector.multi_reduction <add>, %6, %cst_3 [1] : vector<8x16xf32> to vector<8xf32>
    %8 = vector.shape_cast %7 : vector<8xf32> to vector<8x1xf32>
    %9 = math.log %8 : vector<8x1xf32>
    %10 = arith.addf %3, %9 : vector<8x1xf32>
    %11 = tpu.iota {dimensions = array<i32: 1>} : vector<1x16xi32>
    %12 = vector.broadcast %11 : vector<1x16xi32> to vector<8x16xi32>
    %13 = vector.broadcast %1 : vector<8x1xi32> to vector<8x16xi32>
    %14 = arith.cmpi eq, %12, %13 : vector<8x16xi32>
    %15 = vector.broadcast %10 : vector<8x1xf32> to vector<8x16xf32>
    %16 = arith.subf %15, %0 : vector<8x16xf32>
    %cst_4 = arith.constant 0.000000e+00 : f32
    %17 = vector.broadcast %cst_4 : f32 to vector<8x16xf32>
    %18 = arith.select %14, %17, %16 : vector<8x16xi1>, vector<8x16xf32>
    %cst_5 = arith.constant dense<0.000000e+00> : vector<8xf32>
    %19 = vector.multi_reduction <add>, %18, %cst_5 [1] : vector<8x16xf32> to vector<8xf32>
    %20 = vector.shape_cast %19 : vector<8xf32> to vector<8x1xf32>
    %21 = tpu.iota {dimensions = array<i32: 0>} : vector<8x1xi32>
    %c8_i32 = arith.constant 8 : i32
    %22 = arith.muli %arg0, %c8_i32 : i32
    %23 = vector.broadcast %22 : i32 to vector<8x1xi32>
    %24 = arith.addi %21, %23 : vector<8x1xi32>
    %c8_i32_6 = arith.constant 8 : i32
    %25 = vector.broadcast %c8_i32_6 : i32 to vector<8x1xi32>
    %26 = arith.cmpi slt, %24, %25 : vector<8x1xi32>
    %cst_7 = arith.constant 0.000000e+00 : f32
    %27 = vector.broadcast %cst_7 : f32 to vector<8x1xf32>
    %28 = arith.select %26, %20, %27 : vector<8x1xi1>, vector<8x1xf32>
    %c0_8 = arith.constant 0 : index
    %c0_9 = arith.constant 0 : index
    %29 = vector.load %arg3[%c0_8, %c0_9] : memref<8x1xf32, #tpu.memory_space<vmem>>, vector<8x1xf32>
    tpu.vector_store %arg3[%c0_8, %c0_9], %28 {strides = array<i32>} : memref<8x1xf32, #tpu.memory_space<vmem>>, vector<8x1xf32>,
    return
  }
  func.func @transform_0(%arg0: i32) -> (i32, i32) {
    %c0_i32 = arith.constant 0 : i32
    %c0_i32_0 = arith.constant 0 : i32
    return %arg0, %c0_i32 : i32, i32
  }
  func.func @transform_1(%arg0: i32) -> (i32, i32) {
    %c0_i32 = arith.constant 0 : i32
    %c0_i32_0 = arith.constant 0 : i32
    return %arg0, %c0_i32 : i32, i32
  }
  func.func @transform_2(%arg0: i32) -> (i32, i32) {
    %c0_i32 = arith.constant 0 : i32
    %c0_i32_0 = arith.constant 0 : i32
    return %arg0, %c0_i32 : i32, i32
  }
}

</mosaic_0001>

<bundles_post_ra>
// kernel: tpu_custom_call.1
= control target key start
LH: loop header
LB: loop body
LE: loop exit
PB: predicated region body
PF: predicated region fallthrough
CT: control target
= control target key end

     0   :  { %vm13_vm0 = vcmask 130048   ;;  %v57_v3 = vmov 0   ;;  %v26_v10 = vlaneseq  ;;  %vm44_vm2 = vcmask 7168   ;;  %s85_s0 = inlined_call_operand.vmem [shape: f32[8,16], index: 0, kind: input, shape index: {}]   ;;  %s86_s1 = inlined_call_operand.vmem [shape: s32[8,1], index: 1, kind: input, shape index: {}]   ;;  %s87_s2 = inlined_call_operand.vmem [shape: f32[8,1], index: 2, kind: output, shape index: {}]  }
   0x1   :  { %v11_v0 = vld [vmem:[%s85_s0] sm:$0xff]  ;;  %51 = vset.pattern.permute.xlu1 %v57_v3  ;;  %52 = vset.pattern.permute.xlu0 %v57_v3 }
   0x2   :  { %v14_v1 = vsel %vm13_vm0, %v11_v0, -inf  ;;  %v12_v2 = vld [vmem:[%s86_s1] sm:$0xff]  ;;  %v27_v12 = vand.u32 127, %v26_v10 }
   0x3   :  { %15 = vmax.xlane.f32.xlu0 %v14_v1  ;;  %29 = vperm.xlu1 %51, %v12_v2  }
  0x75   :  { %v30_v14 = vpop.permute.xlu1 %29 }
  0x76   :  { %v16_v4 = vpop.xlane.xlu0 %15  ;;  %vm31_vm1 = vcmp.eq.s32.totalorder %v27_v12, %v30_v14 }
  0x77   :  { %v17_v5 = vsub.f32 %v11_v0, %v16_v4 }
  0x79   :  { %v18_v6 = vmul.f32 1.442695, %v17_v5 }
  0x7b   :  { %53 = vpow2.f32 %v18_v6 }
  0x81   :  { %v54_v7 = vpop.eup %53 }
  0x82   :  { %v20_v8 = vsel %vm13_vm0, %v54_v7, 0.0 }
  0x83   :  { %21 = vadd.xlane.f32.xlu0 %v20_v8 }
  0xf6   :  { %v22_v9 = vpop.xlane.xlu0 %21 }
  0xf7   :  { %55 = vlog2.f32 %v22_v9 }
  0xfd   :  { %v56_v11 = vpop.eup %55 }
  0xfe   :  { %v24_v13 = vmul.f32 0.6931472, %v56_v11 }
 0x100   :  { %v25_v15 = vadd.f32 %v24_v13, %v16_v4 }
 0x102   :  { %v32_v16 = vsub.f32 %v25_v15, %v11_v0 }
 0x104   :  { %v33_v17 = vsel %vm31_vm1, 0.0, %v32_v16 }
 0x105   :  { %v34_v18 = vsel %vm13_vm0, %v33_v17, 0.0 }
 0x106   :  { %35 = vadd.xlane.f32.xlu1 %v34_v18 }
 0x179   :  { %v36_v19 = vpop.xlane.xlu1 %35 }
 0x17a   :  { %45 = vst.msk [vmem:[%s87_s2] sm:$0xff] %vm44_vm2, %v36_v19 }

</bundles_post_ra>
